<compile_context>
chip_gen: v7x
topology: tpu7x:2x2x1
jax: 0.10.0
libtpu: 0.0.40
codegen_flags: <defaults>
</compile_context>

<pallas_src>
import math

import jax
import jax.numpy as jnp
from jax.experimental import pallas as pl
from jax.experimental.pallas import tpu as pltpu

IN_FEATURES = 10        # K
OUT_FEATURES = 60       # N (stored directly, lane dim == full array dim)
TM = 4096               # row tile for the M-tiled path (multiple of 8)
SMALL_M = 1024          # at/below this, skip grid/pipeline machinery entirely


def linear_relu_kernel(x_ref, w_ref, b_ref, o_ref):
    # x_ref: [tm, K]; w_ref: [K, N] (pre-transposed once at prep time);
    # b_ref: [1, N]; o_ref: [tm, N] (N == full array last dim -> legal block).
    y = jnp.dot(x_ref[...], w_ref[...], preferred_element_type=jnp.float32)
    y = y + b_ref[...]                              # broadcast bias over rows
    o_ref[...] = jnp.maximum(y, 0.0).astype(o_ref.dtype)


def prepare_params(weight, bias):
    """One-time prep (at parameter-load time, off the hot path): transpose the
    PyTorch [out, in] weight to [in, out] for the canonical [M,K]x[K,N] MXU
    form, and make bias a [1, N] row for in-kernel broadcast."""
    w_t = jnp.asarray(weight).T                     # [K, N] = [10, 60]
    b_row = jnp.asarray(bias).reshape(1, OUT_FEATURES)
    return w_t, b_row


def _cost(m):
    return pl.CostEstimate(
        flops=2 * m * IN_FEATURES * OUT_FEATURES,
        transcendentals=0,
        bytes_accessed=4 * (m * IN_FEATURES + IN_FEATURES * OUT_FEATURES
                            + OUT_FEATURES + m * OUT_FEATURES),
    )


def _linear_relu_small(x2d, w_t, b_row):
    # Whole problem fits trivially in VMEM: no grid, no pipeline bookkeeping.
    m = x2d.shape[0]
    return pl.pallas_call(
        linear_relu_kernel,
        out_shape=jax.ShapeDtypeStruct((m, OUT_FEATURES), x2d.dtype),
        in_specs=[
            pl.BlockSpec(memory_space=pltpu.MemorySpace.VMEM),
            pl.BlockSpec(memory_space=pltpu.MemorySpace.VMEM),
            pl.BlockSpec(memory_space=pltpu.MemorySpace.VMEM),
        ],
        out_specs=pl.BlockSpec(memory_space=pltpu.MemorySpace.VMEM),
        cost_estimate=_cost(m),
    )(x2d, w_t, b_row)


def _linear_relu_tiled(x2d, w_t, b_row):
    # Row-tiled, row-parallel path for large M: weight/bias stay resident in
    # VMEM across the grid; only x and the 60-wide output stream from/to HBM.
    # Ragged last block is handled by Pallas (OOB output rows are not written
    # back), so there is no jnp.pad of x and no out[:m] slice pass.
    m = x2d.shape[0]
    return pl.pallas_call(
        linear_relu_kernel,
        out_shape=jax.ShapeDtypeStruct((m, OUT_FEATURES), x2d.dtype),
        grid=(pl.cdiv(m, TM),),
        in_specs=[
            pl.BlockSpec((TM, IN_FEATURES), lambda i: (i, 0)),
            pl.BlockSpec((IN_FEATURES, OUT_FEATURES), lambda i: (0, 0)),
            pl.BlockSpec((1, OUT_FEATURES), lambda i: (0, 0)),
        ],
        out_specs=pl.BlockSpec((TM, OUT_FEATURES), lambda i: (i, 0)),
        compiler_params=pltpu.CompilerParams(
            dimension_semantics=("parallel",),      # real lever only on v7x 2-TC
        ),
        cost_estimate=_cost(m),
    )(x2d, w_t, b_row)


def residual_block_forward(x, w_t, b_row):
    """ResidualBlock.forward: relu(linear(x)).  x: [..., 10] -> [..., 60].
    Note: despite the class name there is no residual add in forward."""
    lead = x.shape[:-1]
    m = math.prod(lead) if lead else 1
    x2d = x.reshape(m, IN_FEATURES)
    if m <= SMALL_M:
        out = _linear_relu_small(x2d, w_t, b_row)
    else:
        out = _linear_relu_tiled(x2d, w_t, b_row)
    return out.reshape(*lead, OUT_FEATURES)


if __name__ == "__main__":
    key = jax.random.PRNGKey(0)
    kx, kw, kb, kx2 = jax.random.split(key, 4)

    # Small shape consistent with forward: last dim must be 10 (Linear(10, 60)).
    x = jax.random.normal(kx, (2, 4, 8, IN_FEATURES), dtype=jnp.float32)

    # Deterministic params in PyTorch nn.Linear layout: weight [60, 10], bias [60].
    bound = 1.0 / (IN_FEATURES ** 0.5)
    weight = jax.random.uniform(
        kw, (OUT_FEATURES, IN_FEATURES), minval=-bound, maxval=bound,
        dtype=jnp.float32)
    bias = jax.random.uniform(
        kb, (OUT_FEATURES,), minval=-bound, maxval=bound, dtype=jnp.float32)

    w_t, b_row = prepare_params(weight, bias)      # one-time, outside hot path
    fwd = jax.jit(residual_block_forward)

    # Small-M (no-grid) path.
    out = fwd(x, w_t, b_row)
    jax.block_until_ready(out)
    ref = jnp.maximum(jnp.einsum("...k,nk->...n", x, weight) + bias, 0.0)
    assert out.shape == (2, 4, 8, OUT_FEATURES)
    assert jnp.allclose(out, ref, atol=1e-5, rtol=1e-5)

    # Large-M (row-tiled, parallel) path with a ragged last block:
    # grid = cdiv(10000, 4096) = 3, last block has 1808 valid rows.
    x_big = jax.random.normal(kx2, (10000, IN_FEATURES), dtype=jnp.float32)
    out_big = fwd(x_big, w_t, b_row)
    jax.block_until_ready(out_big)
    ref_big = jnp.maximum(x_big @ weight.T + bias, 0.0)
    assert out_big.shape == (10000, OUT_FEATURES)
    assert jnp.allclose(out_big, ref_big, atol=1e-5, rtol=1e-5)

    # TODO(synk): conv1/conv2 are declared in __init__ but never used in
    # forward, so they are intentionally not implemented here.
    print("KERNEL_OK")
</pallas_src>

<mosaic_0001>
module attributes {stable_mosaic.version = 11 : i64} {
  func.func @linear_relu_kernel(%arg0: memref<64x10xf32, #tpu.memory_space<vmem>>, %arg1: memref<10x60xf32, #tpu.memory_space<vmem>>, %arg2: memref<1x60xf32, #tpu.memory_space<vmem>>, %arg3: memref<64x60xf32, #tpu.memory_space<vmem>>) attributes {dimension_semantics = [], scalar_prefetch = 0 : i64, scratch_operands = 0 : i64, tpu.core_type = #tpu.core_type<tc>} {
    %c0 = arith.constant 0 : index
    %c0_0 = arith.constant 0 : index
    %0 = vector.load %arg0[%c0, %c0_0] : memref<64x10xf32, #tpu.memory_space<vmem>>, vector<64x10xf32>
    %c0_1 = arith.constant 0 : index
    %c0_2 = arith.constant 0 : index
    %1 = vector.load %arg1[%c0_1, %c0_2] : memref<10x60xf32, #tpu.memory_space<vmem>>, vector<10x60xf32>
    %cst = arith.constant dense<0.000000e+00> : vector<64x60xf32>
    %2 = tpu.matmul %0, %1, %cst {dimension_numbers = #tpu.dot_dimension_numbers<[1], [0], [0], [1], [0, 0, 1, 1], [], []>} : vector<64x10xf32>, vector<10x60xf32>, vector<64x60xf32> -> vector<64x60xf32>
    %c0_3 = arith.constant 0 : index
    %c0_4 = arith.constant 0 : index
    %3 = vector.load %arg2[%c0_3, %c0_4] : memref<1x60xf32, #tpu.memory_space<vmem>>, vector<1x60xf32>
    %4 = vector.broadcast %3 : vector<1x60xf32> to vector<64x60xf32>
    %5 = arith.addf %2, %4 : vector<64x60xf32>
    %cst_5 = arith.constant 0.000000e+00 : f32
    %6 = vector.broadcast %cst_5 : f32 to vector<64x60xf32>
    %7 = arith.maximumf %5, %6 : vector<64x60xf32>
    %c0_6 = arith.constant 0 : index
    %c0_7 = arith.constant 0 : index
    %8 = vector.load %arg3[%c0_6, %c0_7] : memref<64x60xf32, #tpu.memory_space<vmem>>, vector<64x60xf32>
    tpu.vector_store %arg3[%c0_6, %c0_7], %7 {strides = array<i32>} : memref<64x60xf32, #tpu.memory_space<vmem>>, vector<64x60xf32>,
    return
  }
}

</mosaic_0001>

<bundles_post_ra>
// kernel: residual_block_forward.1
= control target key start
LH: loop header
LB: loop body
LE: loop exit
PB: predicated region body
PF: predicated region fallthrough
CT: control target
= control target key end

     0   :  { %8 = vsyncpa [#allocation3], 0  ;;  %s441_s0 = inlined_call_operand.hbm [shape: f32[64,10], index: 0, kind: input, shape index: {}]   ;;  %s442_s1 = inlined_call_operand.hbm [shape: f32[10,60], index: 1, kind: input, shape index: {}]   ;;  %s443_s2 = inlined_call_operand.vmem [shape: f32[1,60], index: 2, kind: input, shape index: {}]   ;;  %s444_s3 = inlined_call_operand.hbm [shape: f32[64,60], index: 3, kind: output, shape index: {}]  }
   0x1   :  { %9 = vsyncpa [#allocation6], 0 }
   0x2   :  { %10 = vsyncpa [#allocation4], 0  ;;  %s351_s12 = smov [#allocation2]   ;;  %s279_s16 = scalar_lea.hbm %s441_s0, 1024 }
   0x3   :  { %s16_s13 = sshll.u32 %s351_s12, 4  ;;  %p280_p0 = scmp.ne.s32.totalorder %s441_s0, %s279_s16  ;;  %s17_s13 = int_to_ptr.vmem [resolvable:$true] %s16_s13 }
   0x4   :  { %p283_p1 = scmp.lt.u32.totalorder %s279_s16, %s441_s0 }
   0x6   :  { %p285_p2 = pnand %p283_p1, %p280_p0 }
   0x8   :  { %288 = shalt.err (!%p285_p2)
}
   0x9   :  { %s289_s21 = scalar_lea.vmem %s17_s13, 1024  ;;  %p294_p4 = scmp.lt.s32.totalorder %s17_s13, %s17_s13 }
   0xa   :  { %p290_p3 = scmp.ne.s32.totalorder %s17_s13, %s289_s21  ;;  %p295_p5 = scmp.lt.s32.totalorder %s289_s21, %s289_s21 }
   0xc   :  { %p296_p6 = por %p295_p5, %p294_p4 }
   0xe   :  { %p297_p7 = pnand %p296_p6, %p290_p3 }
  0x10   :  { %300 = shalt.err (!%p297_p7)
}
  0x11   :  { %s352_s22 = smov 128   ;;  %s353_s23 = smov 8  }
  0x12   :  { %22 = dma.hbm_to_vmem [thread:$0]  %s441_s0, 1024, %s17_s13, [#allocation3], %s352_s22, %s352_s22, %s353_s23  }
  0x13   :  { %s354_s26 = smov [#allocation5]   ;;  %s301_s30 = scalar_lea.hbm %s442_s1, 256 }
  0x14   :  { %s28_s27 = sshll.u32 %s354_s26, 4  ;;  %p302_p8 = scmp.ne.s32.totalorder %s442_s1, %s301_s30  ;;  %s29_s27 = int_to_ptr.vmem [resolvable:$true] %s28_s27 }
  0x15   :  { %p305_p9 = scmp.lt.u32.totalorder %s301_s30, %s442_s1 }
  0x17   :  { %p307_p10 = pnand %p305_p9, %p302_p8 }
  0x19   :  { %310 = shalt.err (!%p307_p10)
}
  0x1a   :  { %s311_s8 = scalar_lea.vmem %s29_s27, 256  ;;  %p316_p12 = scmp.lt.s32.totalorder %s29_s27, %s29_s27 }
  0x1b   :  { %p312_p11 = scmp.ne.s32.totalorder %s29_s27, %s311_s8  ;;  %p317_p13 = scmp.lt.s32.totalorder %s311_s8, %s311_s8 }
  0x1d   :  { %p318_p0 = por %p317_p13, %p316_p12 }
  0x1f   :  { %p319_p1 = pnand %p318_p0, %p312_p11 }
  0x21   :  { %322 = shalt.err (!%p319_p1)
}
  0x22   :  { %34 = dma.hbm_to_vmem [thread:$0]  %s442_s1, 256, %s29_s27, [#allocation6], %s352_s22, %s352_s22, %s353_s23  }
  0x23   :  { %345 = dma.done.wait [#allocation3], 1024  }
  0x24   :  { %346 = vsyncadd [#allocation3], 4294966272 }
  0x25   :  { %347 = dma.done.wait [#allocation6], 256  }
  0x26   :  { %348 = vsyncadd [#allocation6], 4294967040  ;;  %vm85_vm0 = vcmask 1041408   ;;  %vm60_vm1 = vcmask 80896   ;;  %vm355_vm2 = vmmov 1   ;;  %v51_v0 = vld [vmem:[#allocation5] sm:$0xff] }
  0x27   :  { %vm266_vm3 = vmpackc.low %vm85_vm0, %vm355_vm2  ;;  %v52_v1 = vld [vmem:[#allocation5 + $0x8] sm:$0x3]  ;;  %v43_v2 = vld [vmem:[#allocation2] sm:$0xff]  ;;  %vm202_vm4 = vcmask 490496  }
  0x28   :  { %v265_v3 = vpack.c.bf16 %v52_v1, %v51_v0  ;;  %253 = vmatprep.mubr.msk.f32.mxu0 %vm60_vm1, %v43_v2  ;;  %v47_v4 = vld [vmem:[#allocation2 + $0x20] sm:$0xff]  ;;  %v44_v5 = vld [vmem:[#allocation2 + $0x8] sm:$0xff]  ;;  %v45_v7 = vld [vmem:[#allocation2 + $0x10] sm:$0xff] }
  0x29   :  { %259 = vmatprep.mubr.msk.f32.mxu1 %vm60_vm1, %v47_v4  ;;  %v48_v6 = vld [vmem:[#allocation2 + $0x28] sm:$0xff]  ;;  %v49_v8 = vld [vmem:[#allocation2 + $0x30] sm:$0xff]  ;;  %v46_v9 = vld [vmem:[#allocation2 + $0x18] sm:$0xff] }
  0x2a   :  { %267 = vmatprep.subr.msk.bf16.mxu0 %vm266_vm3, %v265_v3  ;;  %271 = vmatprep.subr.msk.bf16.mxu1 %vm266_vm3, %v265_v3  ;;  %v50_v10 = vld [vmem:[#allocation2 + $0x38] sm:$0xff]  ;;  %v229_v11 = vld [vmem:[%s443_s2] ss:$0 sm:$0xff]  ;;  %s356_s2 = smov [#allocation7]  }
  0x2b   :  { %270 = vmatpush3.bf16.msk.msra.mxu0 %vm266_vm3, %v265_v3  ;;  %272 = vmatpush3.bf16.msk.msra.mxu1 %vm266_vm3, %v265_v3  ;;  %s216_s11 = sshll.u32 %s356_s2, 4  ;;  %s217_s11 = int_to_ptr.vmem [resolvable:$true] %s216_s11 }
  0x2c   :  { %s323_s12 = scalar_lea.vmem %s217_s11, 1024  ;;  %p328_p3 = scmp.lt.s32.totalorder %s217_s11, %s217_s11 }
  0x2d   :  { %p324_p2 = scmp.ne.s32.totalorder %s217_s11, %s323_s12  ;;  %p329_p4 = scmp.lt.s32.totalorder %s323_s12, %s323_s12 }
  0x2e   :  { %254 = vmatmul.mubr.msk.f32.vlgmr.msra.gmra.mrb[0].mxu0 %vm60_vm1, %v44_v5  ;;  %260 = vmatmul.mubr.msk.f32.vlgmr.msra.gmra.mrb[0].mxu1 %vm60_vm1, %v48_v6 }
  0x2f   :  { %256 = vmatprep.mubr.msk.f32.mxu0 %vm60_vm1, %v45_v7  ;;  %262 = vmatprep.mubr.msk.f32.mxu1 %vm60_vm1, %v49_v8  ;;  %p330_p5 = por %p329_p4, %p328_p3 }
  0x31   :  { %p331_p6 = pnand %p330_p5, %p324_p2 }
  0x32   :  { %257 = vmatmul.mubr.msk.f32.gmra.mrb[2].mxu0 %vm60_vm1, %v46_v9  ;;  %263 = vmatmul.mubr.msk.f32.gmra.mrb[2].mxu1 %vm60_vm1, %v50_v10 }
 0x101   :  { %v255_v12 = vpop.f32.mrb[0].mxu0  ;;  %v261_v13 = vpop.f32.mrb[0].mxu1 }
 0x102   :  { %v161_v14 = vadd.f32 %v255_v12, %v229_v11  ;;  %v181_v15 = vadd.f32 %v261_v13, %v229_v11  ;;  %v155_v16 = vpop.f32.mrb[1].mxu0  ;;  %v175_v17 = vpop.f32.mrb[1].mxu1 }
 0x103   :  { %v156_v18 = vadd.f32 %v229_v11, %v155_v16  ;;  %v176_v19 = vadd.f32 %v229_v11, %v175_v17 }
 0x104   :  { %v195_v20 = vmax.f32 %v161_v14, 0.0  ;;  %v199_v21 = vmax.f32 %v181_v15, 0.0 }
 0x105   :  { %v194_v22 = vmax.f32 %v156_v18, 0.0  ;;  %v198_v23 = vmax.f32 %v176_v19, 0.0  ;;  %v258_v24 = vpop.f32.mrb[2].mxu0  ;;  %v264_v25 = vpop.f32.mrb[2].mxu1 }
 0x106   :  { %204 = vst.msk [vmem:[#allocation7 + $0x8] sm:$0xff] %vm202_vm4, %v195_v20  ;;  %208 = vst.msk [vmem:[#allocation7 + $0x28] sm:$0xff] %vm202_vm4, %v199_v21  ;;  %v171_v26 = vadd.f32 %v258_v24, %v229_v11  ;;  %v191_v27 = vadd.f32 %v264_v25, %v229_v11  ;;  %v165_v28 = vpop.f32.mrb[3].mxu0  ;;  %v185_v29 = vpop.f32.mrb[3].mxu1 }
 0x107   :  { %203 = vst.msk [vmem:[#allocation7] sm:$0xff] %vm202_vm4, %v194_v22  ;;  %207 = vst.msk [vmem:[#allocation7 + $0x20] sm:$0xff] %vm202_vm4, %v198_v23  ;;  %v166_v30 = vadd.f32 %v229_v11, %v165_v28  ;;  %v186_v31 = vadd.f32 %v229_v11, %v185_v29 }
 0x108   :  { %v197_v32 = vmax.f32 %v171_v26, 0.0  ;;  %v201_v33 = vmax.f32 %v191_v27, 0.0 }
 0x109   :  { %v196_v34 = vmax.f32 %v166_v30, 0.0  ;;  %v200_v35 = vmax.f32 %v186_v31, 0.0 }
 0x10a   :  { %206 = vst.msk [vmem:[#allocation7 + $0x18] sm:$0xff] %vm202_vm4, %v197_v32  ;;  %210 = vst.msk [vmem:[#allocation7 + $0x38] sm:$0xff] %vm202_vm4, %v201_v33 }
 0x10b   :  { %205 = vst.msk [vmem:[#allocation7 + $0x10] sm:$0xff] %vm202_vm4, %v196_v34  ;;  %209 = vst.msk [vmem:[#allocation7 + $0x30] sm:$0xff] %vm202_vm4, %v200_v35 }
 0x10c   :  { %334 = shalt.err (!%p331_p6)
}
 0x10d   :  { %s335_s15 = scalar_lea.hbm %s444_s3, 1024 }
 0x10e   :  { %p336_p7 = scmp.ne.s32.totalorder %s444_s3, %s335_s15  ;;  %p339_p8 = scmp.lt.u32.totalorder %s335_s15, %s444_s3 }
 0x110   :  { %p341_p9 = pnand %p339_p8, %p336_p7 }
 0x112   :  { %344 = shalt.err (!%p341_p9)
}
 0x113   :  { %222 = dma.vmem_to_hbm [thread:$0]  %s217_s11, 1024, %s444_s3, [#allocation4], %s352_s22, %s352_s22, %s353_s23  }
 0x114   :  { %349 = dma.done.wait [#allocation4], 1024  }
 0x115   :  { %350 = vsyncadd [#allocation4], 4294966272 }
 0x116   :  { %226 = vsyncpa [#allocation3], 1 }
 0x117   :  { %227 = vsyncpa [#allocation6], 1 }
 0x118   :  { %228 = vsyncpa [#allocation4], 1 }

</bundles_post_ra>
